<compile_context>
chip_gen: v6e
topology: v6e:2x2x1
jax: 0.10.0
libtpu: 0.0.40
codegen_flags: <defaults>
</compile_context>

<pallas_src>
import functools
import math

import jax
import jax.numpy as jnp
import numpy as np
from jax.experimental import pallas as pl
from jax.experimental.pallas import tpu as pltpu


def _round_up(x, m):
    return ((x + m - 1) // m) * m


def _pick_tile(total, prefs):
    for t in prefs:
        if total >= t and total % t == 0:
            return t
    return total


# ---------------------------------------------------------------------------
# Pallas kernel: in-kernel 3-tap (kh) stride-2 conv as accumulated GEMMs
#   lhs blocks are per-frame H-phase arrays with the W taps pre-folded into K.
# ---------------------------------------------------------------------------
def _conv3x3s2_bn_relu_kernel(pe_ref, po_ref, w_ref, shift_ref, o_ref, acc_ref,
                              *, ow, m):
    # pe_ref:    (R=m+ow, TK) bf16  even-H-phase rows of one frame (W taps in K)
    # po_ref:    (R,      TK) bf16  odd-H-phase rows of the same frame
    # w_ref:     (3, TK, TN)  bf16  per-kh weights, BN scale folded in
    # shift_ref: (1, TN)      f32   fused BN shift (beta - mean * scale)
    # o_ref:     (m, TN)      out_dtype
    # acc_ref:   (m, TN)      f32 VMEM accumulator (persists across k steps)
    kc = pl.program_id(2)

    @pl.when(kc == 0)
    def _():
        acc_ref[...] = jnp.zeros_like(acc_ref)

    acc = acc_ref[...]
    # kh = 0: even-phase rows [0, m)
    acc = acc + jnp.dot(pe_ref[0:m, :], w_ref[0],
                        preferred_element_type=jnp.float32)
    # kh = 1: odd-phase rows [0, m)
    acc = acc + jnp.dot(po_ref[0:m, :], w_ref[1],
                        preferred_element_type=jnp.float32)
    # kh = 2: even-phase rows shifted down one output row: [ow, ow + m)
    acc = acc + jnp.dot(pe_ref[ow:ow + m, :], w_ref[2],
                        preferred_element_type=jnp.float32)
    acc_ref[...] = acc

    @pl.when(kc == pl.num_programs(2) - 1)
    def _():
        y = jnp.maximum(acc_ref[...] + shift_ref[...], 0.0)   # f32 epilogue
        o_ref[...] = y.astype(o_ref.dtype)


def _conv_block_nhwc(xb, w, scale, shift, out_dtype):
    """One ConvModule on channels-last frames.

    xb:    (B, H, W, Cin)  bfloat16 (frames = N*T)
    w:     (3, 3, Cin, Cout) float32 (HWIO; == torch (Cout,Cin,1,3,3))
    scale: (Cout,) fused BN scale = gamma / sqrt(var + eps)
    shift: (Cout,) fused BN shift = beta - mean * scale
    returns (B, OH, OW, Cout) in out_dtype
    """
    B, H, W, Cin = xb.shape
    Cout = w.shape[-1]
    OH = (H - 1) // 2 + 1
    OW = (W - 1) // 2 + 1
    M = OH * OW                      # valid output rows per frame
    R = (OH + 1) * OW                # phase rows per frame (incl. halo row)
    K = 3 * Cin                      # per-kh contraction (kw, cin)
    Kp = _round_up(K, 128)
    Np = _round_up(Cout, 128)
    # 256-wide N / 512-wide K tiles: full-width issues on v6e/v7x MXU, still
    # 128-multiples so v5e's 128x128 MXU is dense; per-step working set stays
    # a few MB -> comfortable under v7x's 64 MiB VMEM with double buffering.
    TN = _pick_tile(Np, (256, 128))
    TK = _pick_tile(Kp, (512, 256, 128))

    # --- glue (XLA): pad, partial im2col along W only, H even/odd phase split
    Hpp = 2 * (OH + 1)
    xp = jnp.pad(xb, ((0, 0), (1, Hpp - H - 1), (1, 1), (0, 0)))   # bf16
    cols = [
        jax.lax.slice(xp, (0, 0, kw, 0),
                      (B, Hpp, kw + 2 * (OW - 1) + 1, Cin),
                      (1, 1, 2, 1))
        for kw in range(3)
    ]
    pw = jnp.concatenate(cols, axis=-1)            # (B, Hpp, OW, 3*Cin)
    pe = pw[:, 0::2].reshape(B, R, K)              # even padded rows
    po = pw[:, 1::2].reshape(B, R, K)              # odd padded rows
    if Kp > K:
        pe = jnp.pad(pe, ((0, 0), (0, 0), (0, Kp - K)))
        po = jnp.pad(po, ((0, 0), (0, 0), (0, Kp - K)))

    # --- fold BN scale into conv weights; (kh, kw*Cin + c) matches lhs K order
    wk = (w.reshape(3, K, Cout) *
          scale.reshape(1, 1, Cout).astype(jnp.float32)).astype(jnp.bfloat16)
    wk = jnp.pad(wk, ((0, 0), (0, Kp - K), (0, Np - Cout)))
    shift_p = jnp.pad(shift.reshape(1, Cout).astype(jnp.float32),
                      ((0, 0), (0, Np - Cout)))

    flops = 2 * B * M * (9 * Cin) * Cout
    bytes_accessed = ((pe.size + po.size + wk.size) * 2 + shift_p.size * 4 +
                      B * M * Np * jnp.dtype(out_dtype).itemsize)
    cost = pl.CostEstimate(flops=int(flops), transcendentals=0,
                           bytes_accessed=int(bytes_accessed))

    kernel = functools.partial(_conv3x3s2_bn_relu_kernel, ow=OW, m=M)
    out = pl.pallas_call(
        kernel,
        out_shape=jax.ShapeDtypeStruct((B, M, Np), out_dtype),
        grid_spec=pltpu.PrefetchScalarGridSpec(
            num_scalar_prefetch=0,
            grid=(B, Np // TN, Kp // TK),
            in_specs=[
                pl.BlockSpec((None, R, TK), lambda b, n, k: (b, 0, k)),
                pl.BlockSpec((None, R, TK), lambda b, n, k: (b, 0, k)),
                pl.BlockSpec((3, TK, TN), lambda b, n, k: (0, k, n)),
                pl.BlockSpec((1, TN), lambda b, n, k: (0, n)),
            ],
            out_specs=pl.BlockSpec((None, M, TN), lambda b, n, k: (b, 0, n)),
            scratch_shapes=[pltpu.VMEM((M, TN), jnp.float32)],
        ),
        compiler_params=pltpu.CompilerParams(
            dimension_semantics=("parallel", "parallel", "arbitrary"),
            vmem_limit_bytes=32 * 1024 * 1024,
        ),
        cost_estimate=cost,
    )(pe, po, wk, shift_p)

    return out[:, :, :Cout].reshape(B, OH, OW, Cout)


def spatial_modulation_level(x, ops):
    """Apply the stacked conv blocks of one pyramid level.

    x: (N, Cin, T, H, W) float32 NCDHW. Intermediate blocks stay bf16 and
    channels-last between pallas_calls; only the level output goes back to
    f32 NCDHW.
    """
    N, Cin, T, H, W = x.shape
    y = jnp.transpose(x, (0, 2, 3, 4, 1)).reshape(N * T, H, W, Cin)
    y = y.astype(jnp.bfloat16)                       # bf16 before all glue
    for idx, (w, scale, shift) in enumerate(ops):
        last = idx == len(ops) - 1
        out_dtype = jnp.float32 if last else jnp.bfloat16
        y = _conv_block_nhwc(y, w, scale, shift, out_dtype)
    B, OH, OW, Cout = y.shape
    return y.reshape(N, T, OH, OW, Cout).transpose(0, 4, 1, 2, 3)


# Plain-JAX reference (verification only, f32 end to end).
def _conv_bn_relu_ref(x, w, scale, shift):
    N, Cin, T, H, W = x.shape
    Cout = w.shape[-1]
    B = N * T
    xb = jnp.transpose(x, (0, 2, 3, 4, 1)).reshape(B, H, W, Cin)
    y = jax.lax.conv_general_dilated(
        xb, w, window_strides=(2, 2), padding=((1, 1), (1, 1)),
        dimension_numbers=("NHWC", "HWIO", "NHWC"),
    )
    y = y * scale.reshape(1, 1, 1, Cout) + shift.reshape(1, 1, 1, Cout)
    y = jnp.maximum(y, 0.0)
    OH, OW = y.shape[1], y.shape[2]
    return y.reshape(N, T, OH, OW, Cout).transpose(0, 4, 1, 2, 3)


# ---------------------------------------------------------------------------
# SpatialModulation
# ---------------------------------------------------------------------------
class SpatialModulationPallas:
    def __init__(self, in_channels, out_channels, key):
        self.levels = []  # per level: None (Identity) or list of (w, scale, shift)
        for channel in in_channels:
            downsample_scale = out_channels // channel
            if downsample_scale < 1:
                self.levels.append(None)
                continue
            # non-power-of-two ratios would silently truncate in the original
            assert downsample_scale & (downsample_scale - 1) == 0, (
                "out_channels / channel must be a power of two")
            downsample_factor = int(math.log2(downsample_scale))
            if downsample_factor < 1:
                self.levels.append(None)  # Identity
                continue
            ops = []
            for factor in range(downsample_factor):
                cin = channel * (2 ** factor)
                cout = channel * (2 ** (factor + 1))
                key, kw_, kg, kb, km, kv = jax.random.split(key, 6)
                w = 0.05 * jax.random.normal(kw_, (3, 3, cin, cout), jnp.float32)
                gamma = 1.0 + 0.1 * jax.random.normal(kg, (cout,), jnp.float32)
                beta = 0.1 * jax.random.normal(kb, (cout,), jnp.float32)
                run_mean = 0.1 * jax.random.normal(km, (cout,), jnp.float32)
                run_var = jnp.abs(jax.random.normal(kv, (cout,), jnp.float32)) + 0.5
                eps = 1e-5
                scale = gamma / jnp.sqrt(run_var + eps)
                shift = beta - run_mean * scale
                ops.append((w, scale, shift))
            self.levels.append(ops)

    def __call__(self, xs):
        outs = []
        for x, ops in zip(xs, self.levels):
            if ops is None:
                outs.append(x)
            else:
                outs.append(spatial_modulation_level(x, ops))
        return outs

    def reference(self, xs):
        outs = []
        for x, ops in zip(xs, self.levels):
            if ops is None:
                outs.append(x)
            else:
                y = x
                for (w, scale, shift) in ops:
                    y = _conv_bn_relu_ref(y, w, scale, shift)
                outs.append(y)
        return outs


if __name__ == "__main__":
    root = jax.random.PRNGKey(0)
    kparams, kdata = jax.random.split(root)

    # Pyramid: level channels (4, 8, 16), out_channels 16
    #  -> level 0: two conv blocks (4->8->16, spatial 16->8->4)
    #  -> level 1: one conv block  (8->16,   spatial 8->4)
    #  -> level 2: Identity        (16,      spatial 4)
    in_channels = (4, 8, 16)
    out_channels = 16
    N, T = 2, 4
    spatials = (16, 8, 4)

    mod = SpatialModulationPallas(in_channels, out_channels, kparams)

    keys = jax.random.split(kdata, len(in_channels))
    xs = [
        jax.random.normal(keys[i], (N, c, T, s, s), jnp.float32)
        for i, (c, s) in enumerate(zip(in_channels, spatials))
    ]

    outs = mod(xs)
    outs = [jax.block_until_ready(o) for o in outs]

    refs = mod.reference(xs)
    # bf16 MXU operands + bf16 intermediate level activations (f32 accumulate
    # and f32 epilogue) -> loosened tolerance vs the f32 reference.
    for o, r in zip(outs, refs):
        np.testing.assert_allclose(np.asarray(o), np.asarray(r),
                                   atol=3e-2, rtol=3e-2)

    print("KERNEL_OK")
</pallas_src>

<mosaic_0001>
module attributes {stable_mosaic.version = 11 : i64} {
  func.func @_conv3x3s2_bn_relu_kernel(%arg0: i32, %arg1: i32, %arg2: i32, %arg3: memref<1x72x128xbf16, #tpu.memory_space<vmem>>, %arg4: memref<1x72x128xbf16, #tpu.memory_space<vmem>>, %arg5: memref<3x128x128xbf16, #tpu.memory_space<vmem>>, %arg6: memref<1x128xf32, #tpu.memory_space<vmem>>, %arg7: memref<1x64x128xbf16, #tpu.memory_space<vmem>>, %arg8: memref<64x128xf32, #tpu.memory_space<vmem>>) attributes {dimension_semantics = [#tpu.dimension_semantics<parallel>, #tpu.dimension_semantics<parallel>, #tpu.dimension_semantics<arbitrary>], iteration_bounds = array<i64: 8, 1, 1>, scalar_prefetch = 0 : i64, scratch_operands = 1 : i64, tpu.core_type = #tpu.core_type<tc>, window_params = [{transform_indices = @transform_0, window_bounds = array<i64: 1, 72, 128>}, {transform_indices = @transform_1, window_bounds = array<i64: 1, 72, 128>}, {transform_indices = @transform_2, window_bounds = array<i64: 3, 128, 128>}, {transform_indices = @transform_3, window_bounds = array<i64: 1, 128>}, {transform_indices = @transform_4, window_bounds = array<i64: 1, 64, 128>}]} {
    %c0_i32 = arith.constant 0 : i32
    %0 = arith.cmpi eq, %arg2, %c0_i32 : i32
    %1 = arith.extui %0 : i1 to i32
    %c0_i32_0 = arith.constant 0 : i32
    %2 = arith.cmpi ne, %1, %c0_i32_0 : i32
    scf.if %2 {
      %cst_23 = arith.constant 0.000000e+00 : f32
      %26 = vector.broadcast %cst_23 : f32 to vector<64x128xf32>
      %c0_24 = arith.constant 0 : index
      %c0_25 = arith.constant 0 : index
      %27 = vector.load %arg8[%c0_24, %c0_25] : memref<64x128xf32, #tpu.memory_space<vmem>>, vector<64x128xf32>
      tpu.vector_store %arg8[%c0_24, %c0_25], %26 {strides = array<i32>} : memref<64x128xf32, #tpu.memory_space<vmem>>, vector<64x128xf32>,
    } else {
    }
    %c0 = arith.constant 0 : index
    %c0_1 = arith.constant 0 : index
    %3 = vector.load %arg8[%c0, %c0_1] : memref<64x128xf32, #tpu.memory_space<vmem>>, vector<64x128xf32>
    %c0_2 = arith.constant 0 : index
    %c0_3 = arith.constant 0 : index
    %c0_4 = arith.constant 0 : index
    %4 = vector.load %arg3[%c0_2, %c0_3, %c0_4] : memref<1x72x128xbf16, #tpu.memory_space<vmem>>, vector<1x64x128xbf16>
    %5 = vector.shape_cast %4 : vector<1x64x128xbf16> to vector<64x128xbf16>
    %c0_5 = arith.constant 0 : index
    %c0_6 = arith.constant 0 : index
    %c0_7 = arith.constant 0 : index
    %6 = vector.load %arg5[%c0_5, %c0_6, %c0_7] : memref<3x128x128xbf16, #tpu.memory_space<vmem>>, vector<1x128x128xbf16>
    %7 = vector.shape_cast %6 : vector<1x128x128xbf16> to vector<128x128xbf16>
    %cst = arith.constant dense<0.000000e+00> : vector<64x128xf32>
    %8 = tpu.matmul %5, %7, %cst {dimension_numbers = #tpu.dot_dimension_numbers<[1], [0], [0], [1], [0, 0, 1, 1], [], []>} : vector<64x128xbf16>, vector<128x128xbf16>, vector<64x128xf32> -> vector<64x128xf32>
    %9 = arith.addf %3, %8 : vector<64x128xf32>
    %c0_8 = arith.constant 0 : index
    %c0_9 = arith.constant 0 : index
    %c0_10 = arith.constant 0 : index
    %10 = vector.load %arg4[%c0_8, %c0_9, %c0_10] : memref<1x72x128xbf16, #tpu.memory_space<vmem>>, vector<1x64x128xbf16>
    %11 = vector.shape_cast %10 : vector<1x64x128xbf16> to vector<64x128xbf16>
    %c1 = arith.constant 1 : index
    %c0_11 = arith.constant 0 : index
    %c0_12 = arith.constant 0 : index
    %12 = vector.load %arg5[%c1, %c0_11, %c0_12] : memref<3x128x128xbf16, #tpu.memory_space<vmem>>, vector<1x128x128xbf16>
    %13 = vector.shape_cast %12 : vector<1x128x128xbf16> to vector<128x128xbf16>
    %cst_13 = arith.constant dense<0.000000e+00> : vector<64x128xf32>
    %14 = tpu.matmul %11, %13, %cst_13 {dimension_numbers = #tpu.dot_dimension_numbers<[1], [0], [0], [1], [0, 0, 1, 1], [], []>} : vector<64x128xbf16>, vector<128x128xbf16>, vector<64x128xf32> -> vector<64x128xf32>
    %15 = arith.addf %9, %14 : vector<64x128xf32>
    %c0_14 = arith.constant 0 : index
    %c8 = arith.constant 8 : index
    %c0_15 = arith.constant 0 : index
    %16 = vector.load %arg3[%c0_14, %c8, %c0_15] : memref<1x72x128xbf16, #tpu.memory_space<vmem>>, vector<1x64x128xbf16>
    %17 = vector.shape_cast %16 : vector<1x64x128xbf16> to vector<64x128xbf16>
    %c2 = arith.constant 2 : index
    %c0_16 = arith.constant 0 : index
    %c0_17 = arith.constant 0 : index
    %18 = vector.load %arg5[%c2, %c0_16, %c0_17] : memref<3x128x128xbf16, #tpu.memory_space<vmem>>, vector<1x128x128xbf16>
    %19 = vector.shape_cast %18 : vector<1x128x128xbf16> to vector<128x128xbf16>
    %cst_18 = arith.constant dense<0.000000e+00> : vector<64x128xf32>
    %20 = tpu.matmul %17, %19, %cst_18 {dimension_numbers = #tpu.dot_dimension_numbers<[1], [0], [0], [1], [0, 0, 1, 1], [], []>} : vector<64x128xbf16>, vector<128x128xbf16>, vector<64x128xf32> -> vector<64x128xf32>
    %21 = arith.addf %15, %20 : vector<64x128xf32>
    %c0_19 = arith.constant 0 : index
    %c0_20 = arith.constant 0 : index
    %22 = vector.load %arg8[%c0_19, %c0_20] : memref<64x128xf32, #tpu.memory_space<vmem>>, vector<64x128xf32>
    tpu.vector_store %arg8[%c0_19, %c0_20], %21 {strides = array<i32>} : memref<64x128xf32, #tpu.memory_space<vmem>>, vector<64x128xf32>,
    %c0_i32_21 = arith.constant 0 : i32
    %23 = arith.cmpi eq, %arg2, %c0_i32_21 : i32
    %24 = arith.extui %23 : i1 to i32
    %c0_i32_22 = arith.constant 0 : i32
    %25 = arith.cmpi ne, %24, %c0_i32_22 : i32
    scf.if %25 {
      %c0_23 = arith.constant 0 : index
      %c0_24 = arith.constant 0 : index
      %26 = vector.load %arg8[%c0_23, %c0_24] : memref<64x128xf32, #tpu.memory_space<vmem>>, vector<64x128xf32>
      %c0_25 = arith.constant 0 : index
      %c0_26 = arith.constant 0 : index
      %27 = vector.load %arg6[%c0_25, %c0_26] : memref<1x128xf32, #tpu.memory_space<vmem>>, vector<1x128xf32>
      %28 = vector.broadcast %27 : vector<1x128xf32> to vector<64x128xf32>
      %29 = arith.addf %26, %28 : vector<64x128xf32>
      %cst_27 = arith.constant 0.000000e+00 : f32
      %30 = vector.broadcast %cst_27 : f32 to vector<64x128xf32>
      %31 = arith.maximumf %29, %30 : vector<64x128xf32>
      %32 = arith.truncf %31 : vector<64x128xf32> to vector<64x128xbf16>
      %c0_28 = arith.constant 0 : index
      %c0_29 = arith.constant 0 : index
      %c0_30 = arith.constant 0 : index
      %33 = vector.load %arg7[%c0_28, %c0_29, %c0_30] : memref<1x64x128xbf16, #tpu.memory_space<vmem>>, vector<1x64x128xbf16>
      %34 = vector.shape_cast %33 : vector<1x64x128xbf16> to vector<64x128xbf16>
      %35 = vector.shape_cast %32 : vector<64x128xbf16> to vector<1x64x128xbf16>
      tpu.vector_store %arg7[%c0_28, %c0_29, %c0_30], %35 {strides = array<i32>} : memref<1x64x128xbf16, #tpu.memory_space<vmem>>, vector<1x64x128xbf16>,
    } else {
    }
    return
  }
  func.func @transform_0(%arg0: i32, %arg1: i32, %arg2: i32) -> (i32, i32, i32) {
    %c0_i32 = arith.constant 0 : i32
    %c0_i32_0 = arith.constant 0 : i32
    return %arg0, %c0_i32, %arg2 : i32, i32, i32
  }
  func.func @transform_1(%arg0: i32, %arg1: i32, %arg2: i32) -> (i32, i32, i32) {
    %c0_i32 = arith.constant 0 : i32
    %c0_i32_0 = arith.constant 0 : i32
    return %arg0, %c0_i32, %arg2 : i32, i32, i32
  }
  func.func @transform_2(%arg0: i32, %arg1: i32, %arg2: i32) -> (i32, i32, i32) {
    %c0_i32 = arith.constant 0 : i32
    %c0_i32_0 = arith.constant 0 : i32
    return %c0_i32, %arg2, %arg1 : i32, i32, i32
  }
  func.func @transform_3(%arg0: i32, %arg1: i32, %arg2: i32) -> (i32, i32) {
    %c0_i32 = arith.constant 0 : i32
    %c0_i32_0 = arith.constant 0 : i32
    return %c0_i32, %arg1 : i32, i32
  }
  func.func @transform_4(%arg0: i32, %arg1: i32, %arg2: i32) -> (i32, i32, i32) {
    %c0_i32 = arith.constant 0 : i32
    %c0_i32_0 = arith.constant 0 : i32
    return %arg0, %c0_i32, %arg1 : i32, i32, i32
  }
}

</mosaic_0001>

<bundles_post_ra>
// kernel: tpu_custom_call.1
= control target key start
LH: loop header
LB: loop body
LE: loop exit
PB: predicated region body
PF: predicated region fallthrough
CT: control target
= control target key end

     0   :  { %s1852_s0 = inlined_call_operand.hbm [shape: bf16[8,72,128], index: 0, kind: input, shape index: {}]   ;;  %s1853_s1 = inlined_call_operand.hbm [shape: bf16[8,72,128], index: 1, kind: input, shape index: {}]   ;;  %s1854_s2 = inlined_call_operand.hbm [shape: bf16[3,128,128], index: 2, kind: input, shape index: {}]   ;;  %s1855_s3 = inlined_call_operand.vmem [shape: f32[1,128], index: 3, kind: input, shape index: {}]   ;;  %s1856_s4 = inlined_call_operand.hbm [shape: bf16[8,64,128], index: 4, kind: output, shape index: {}]  }
   0x1   :  { %1864 = sst [smem:[#allocation18_spill]] %s1852_s0 }
   0x2   :  { %1865 = sst [smem:[#allocation19_spill]] %s1854_s2 }
   0x3   :  { %9 = vsyncpa [#allocation4], 0 }
   0x4   :  { %11 = vsyncpa [#allocation4 + $0x1], 0 }
   0x5   :  { %12 = vsyncpa [#allocation7], 0 }
   0x6   :  { %14 = vsyncpa [#allocation7 + $0x1], 0 }
   0x7   :  { %15 = vsyncpa [#allocation5], 0 }
   0x8   :  { %17 = vsyncpa [#allocation5 + $0x1], 0  ;;  %s1633_s15 = smov 0   ;;  %s1635_s16 = smov 0  }
   0x9   :  { %s1637_s17 = smov 0   ;;  %s1639_s18 = smov 0  }
   0xa   :  { %s1641_s19 = smov 0   ;;  %s1643_s20 = smov 0  }
   0xb LB: > { %1866 = sst [smem:[#allocation14_spill]] %s1586_s17  ;;  %s1664_s21 = sadd.s32 4294967295, %s1598_s20   ;;  %s1598_s20 = sphi %s1643_s20, %s23_s20   ;;  %s1594_s19 = sphi %s1641_s19, %s1884_s19   ;;  %s1590_s18 = sphi %s1639_s18, %s1883_s18   ;;  %s1586_s17 = sphi %s1637_s17, %s1882_s17   ;;  %s1582_s16 = sphi %s1635_s16, %s1886_s16   ;;  %s1578_s15 = sphi %s1633_s15, %s1885_s15  }
   0xc   : > { %1867 = sst [smem:[#allocation15_spill]] %s1594_s19  ;;  %s1089_s22 = sadd.s32 4294967294, %s1598_s20  }
   0xd   : > { %p64_p0 = scmp.ne.s32.totalorder %s1582_s16, %s1578_s15  ;;  %p65_p1 = scmp.eq.s32.totalorder %s1664_s21, 0 }
   0xe   : > { %p178_p3 = scmp.eq.s32.totalorder %s1089_s22, 7  ;;  %p1090_p5 = scmp.ge.s32.totalorder %s1598_s20, 1 }
   0xf   : > { %p1673_p4 = por %p65_p1, %p64_p0  ;;  %p185_p7 = scmp.lt.s32.totalorder %s1598_s20, 9 }
  0x10   : > { %p1678_p6 = por %p178_p3, %p64_p0  ;;  %s1600_s26 = smov [#allocation8]  }
  0x11   : > { %p1683_p8 = pnand %p1090_p5, %p185_p7  ;;  %s201_s27 = sshll.u32 %s1600_s26, 4  ;;  %s202_s27 = int_to_ptr.vmem [resolvable:$true] %s201_s27 }
  0x12   : > { %s42_s29 = sadd.s32 1, %s1594_s19  ;;  %s1439_s30 = scalar_lea.vmem %s202_s27, 3072 }
  0x13   : > { %p1320_p9 = pneg %p1683_p8  ;;  %p1440_p12 = scmp.ne.s32.totalorder %s202_s27, %s1439_s30 }
  0x14   : > { %p1447_p3 = scmp.lt.s32.totalorder %s202_s27, %s202_s27  ;;  %p1448_p5 = scmp.lt.s32.totalorder %s1439_s30, %s1439_s30 }
  0x15   : > { %p1691_p10 = pnand %p1320_p9, %p65_p1 }
  0x16   : > { %p1449_p7 = por %p1448_p5, %p1447_p3 }
  0x17   : > { %p1430_p11 = pneg %p1691_p10 }
  0x19   : > { %p1442_p13 = pnand %p1440_p12, %p1430_p11 }
  0x1b   : > { %p1443_p0 = pneg %p1442_p13 }
  0x1d   : > { %p1450_p2 = pnand %p1449_p7, %p1443_p0 }
  0x1f   : > { %1453 = shalt.err (!%p1450_p2)
}
  0x20   : > { %s1857_s5 = smov 64   ;;  %s1859_s6 = smov 4  }
  0x21   : > { %s1872_s2 = sld [smem:[#allocation19_spill]]  ;;  %p44_p2 = scmp.ge.s32.totalorder %s42_s29, 8 }
  0x22   : > { %s51_s9 = sadd.s32 1, %s1586_s17  ;;  %p58_p9 = scmp.ne.s32.totalorder %s1586_s17, %s1582_s16 }
  0x23   : > { %p59_p11 = scmp.eq.s32.totalorder %s1598_s20, 0  ;;  %s1888_s29 = smov (%p44_p2, %s42_s29), 0 }
  0x24   : > { %1873 = sst [smem:[#allocation16_spill]] %s1888_s29  ;;  %p1874_p13 = scmp.eq.s32.totalorder %s1664_s21, 7 }
  0x25   : > { %p60_p12 = por %p59_p11, %p58_p9  ;;  %s46_s11 = ssub.s32 %s1594_s19, %s1888_s29 }
  0x26   : > { %p1714_p0 = por %p1874_p13, %p58_p9  ;;  %p1336_p3 = scmp.lt.s32.totalorder %s1598_s20, 8 }
  0x27   : > { %1323 = dma.hbm_to_vmem [thread:$0]  (!%p1691_p10), %s1872_s2, 3072, %s202_s27, [#allocation7], %s1857_s5, %s1857_s5, %s1859_s6  }
  0x28   : > { %p49_p5 = scmp.eq.s32.totalorder %s46_s11, 0  ;;  %s221_s12 = sand.u32 1, %s1586_s17  }
  0x29   : > { %s1722_s13 = smul.u32 36, %s221_s12  ;;  %p1729_p10 = pnand %p1336_p3, %p60_p12 }
  0x2a   : > { %s1725_s14 = scalar_select %p49_p5, %s1586_s17, %s51_s9  }
  0x2b   : > { %s1306_s22 = smul.u32 576, %s1594_s19  ;;  %s225_s26 = scalar_lea.vmem [#allocation3], %s1722_s13 }
  0x2c   : > { %1876 = sst [smem:[#allocation17_spill]] %s1725_s14  ;;  %s233_s27 = sshll.u32 %s225_s26, 4  ;;  %s234_s27 = int_to_ptr.vmem [resolvable:$true] %s233_s27 }
  0x2d   : > { %s1878_s0 = sld [smem:[#allocation18_spill]]  ;;  %s243_s11 = sand.u32 1, %s1598_s20  }
  0x2e   : > { %s222_s5 = scalar_lea.sflag [#allocation4], %s221_s12  ;;  %p1456_p7 = pneg %p1729_p10 }
  0x2f   : > { %s1467_s9 = scalar_lea.vmem %s234_s27, 576  ;;  %s1603_s26 = smov [#allocation3]  }
  0x30   : > { %p1468_p2 = scmp.ne.s32.totalorder %s234_s27, %s1467_s9  ;;  %s1472_s6 = sshll.u32 %s1603_s26, 4  ;;  %s1473_s6 = int_to_ptr.vmem [resolvable:$false] %s1472_s6 }
  0x31   : > { %s1474_s2 = scalar_lea.vmem %s1473_s6, 1152  ;;  %p1475_p12 = scmp.lt.s32.totalorder %s234_s27, %s1473_s6 }
  0x32   : > { %p1470_p9 = pnand %p1468_p2, %p1456_p7  ;;  %p1476_p13 = scmp.lt.s32.totalorder %s1474_s2, %s1467_s9 }
  0x33   : > { %s232_s8 = scalar_lea.hbm %s1878_s0, %s1306_s22 }
  0x34   : > { %p1471_p11 = pneg %p1470_p9  ;;  %p1477_p3 = por %p1476_p13, %p1475_p12 }
  0x36   : > { %p1478_p5 = pnand %p1477_p3, %p1471_p11 }
  0x38   : > { %1481 = shalt.err (!%p1478_p5)
}
  0x39   : > { %s1879_s12 = smov 4   ;;  %s1880_s30 = smov 64  }
  0x3a   : > { %1327 = dma.hbm_to_vmem [thread:$0]  (!%p1729_p10), %s232_s8, 576, %s234_s27, %s222_s5, %s1880_s30, %s1880_s30, %s1879_s12  }
  0x3b   : > { %s254_s29 = scalar_lea.hbm %s1853_s1, %s1306_s22  ;;  %s247_s26 = scalar_lea.vmem [#allocation6], %s1722_s13 }
  0x3c   : > { %s255_s19 = sshll.u32 %s247_s26, 4  ;;  %s244_s6 = scalar_lea.sflag [#allocation7], %s243_s11  ;;  %s256_s19 = int_to_ptr.vmem [resolvable:$true] %s255_s19 }
  0x3d   : > { %s1495_s2 = scalar_lea.vmem %s256_s19, 576  ;;  %s1604_s9 = smov [#allocation6]  }
  0x3e   : > { %p1496_p2 = scmp.ne.s32.totalorder %s256_s19, %s1495_s2  ;;  %s1500_s14 = sshll.u32 %s1604_s9, 4  ;;  %s1501_s14 = int_to_ptr.vmem [resolvable:$false] %s1500_s14 }
  0x3f   : > { %s1502_s17 = scalar_lea.vmem %s1501_s14, 1152  ;;  %p1503_p12 = scmp.lt.s32.totalorder %s256_s19, %s1501_s14 }
  0x40   : > { %p1498_p9 = pnand %p1496_p2, %p1456_p7  ;;  %p1504_p13 = scmp.lt.s32.totalorder %s1502_s17, %s1495_s2 }
  0x42   : > { %p1499_p11 = pneg %p1498_p9  ;;  %p1505_p3 = por %p1504_p13, %p1503_p12 }
  0x44   : > { %p1506_p5 = pnand %p1505_p3, %p1499_p11 }
  0x46   : > { %1509 = shalt.err (!%p1506_p5)
}
  0x47   : > { %1330 = dma.hbm_to_vmem [thread:$0]  (!%p1729_p10), %s254_s29, 576, %s256_s19, %s244_s6, %s1880_s30, %s1880_s30, %s1879_s12  }
  0x48   : > { %267 = sbr.rel (%p1683_p8) target bundleno = 370 (0x172), region = 36  ;;  %s1762_s0 = sand.u32 (!%p1683_p8), 1, %s1582_s16  }
  0x49   : > { %s1309_s5 = smul.u32 (!%p1683_p8), 36, %s1762_s0  ;;  %s270_s17 = scalar_lea.sflag (!%p1683_p8), [#allocation4], %s1762_s0 }
  0x4b   : > { %s1766_s13 = scalar_lea.vmem (!%p1683_p8), [#allocation3], %s1309_s5 }
  0x4d   : > { %1561 = dma.done.wait (%p1673_p4), %s270_s17, 576  }
  0x4e   : > { %1563 = vsyncadd (%p1673_p4), %s270_s17, 4294966720  ;;  %s278_s19 = sand.u32 1, %s1664_s21   ;;  %s1773_s29 = scalar_lea.vmem [#allocation6], %s1309_s5 }
  0x4f   : > { %s279_s25 = scalar_lea.sflag [#allocation7], %s278_s19 }
  0x50   : > { %1565 = dma.done.wait (%p1673_p4), %s279_s25, 576  }
  0x51   : > { %1567 = vsyncadd (%p1673_p4), %s279_s25, 4294966720 }
  0x52   : > { %1569 = dma.done.wait (%p65_p1), [#allocation7], 3072  }
  0x53   : > { %1571 = vsyncadd (%p65_p1), [#allocation7], 4294964224  ;;  %v1392_v0 = vld [vmem:[#allocation8 + $0x38] sm:$0xff]   ;;  %v1394_v2 = vld [vmem:[#allocation8 + $0x30] sm:$0xff]   ;;  %s1098_s14 = sshll.u32 %s1762_s0, 5  ;;  %s1157_s28 = sshll.u32 %s1590_s18, 9 }
  0x54   : > { %v1393_v1 = vld [vmem:[#allocation8 + $0x78] sm:$0xff]   ;;  %1217 = vmatprep.subr.bf16.mxu0 %v1392_v0  ;;  %v1395_v3 = vld [vmem:[#allocation8 + $0x70] sm:$0xff]   ;;  %v1396_v4 = vld [vmem:[#allocation8 + $0x28] sm:$0xff]   ;;  %s318_s22 = scalar_lea.vmem [#allocation9], %s1098_s14  ;;  %s1805_s12 = scalar_lea.hbm %s1856_s4, %s1157_s28 }
  0x55   : > { %1241 = vmatprep.subr.bf16.mxu1 %v1393_v1  ;;  %1218 = vmatpush3.bf16.msra.mxu0 %v1392_v0  ;;  %v1397_v5 = vld [vmem:[#allocation8 + $0x68] sm:$0xff]   ;;  %v1398_v6 = vld [vmem:[#allocation8 + $0x20] sm:$0xff]   ;;  %v1400_v8 = vld [vmem:[#allocation8 + $0x18] sm:$0xff]   ;;  %s950_s27 = sshll.u32 %s318_s22, 4  ;;  %s936_s18 = scalar_lea.sflag [#allocation5], %s1762_s0  ;;  %s1800_s27 = int_to_ptr.vmem [resolvable:$true] %s950_s27 }
  0x56   : > { %1242 = vmatpush3.bf16.msra.mxu1 %v1393_v1  ;;  %1219 = vmatprep.subr.bf16.mxu0 %v1394_v2  ;;  %v1399_v7 = vld [vmem:[#allocation8 + $0x60] sm:$0xff]   ;;  %v1401_v9 = vld [vmem:[#allocation8 + $0x58] sm:$0xff]   ;;  %v1402_v10 = vld [vmem:[#allocation8 + $0x10] sm:$0xff]   ;;  %s1510_s30 = scalar_lea.vmem %s1800_s27, 512  ;;  %s1605_s7 = smov [#allocation9]  }
  0x57   : > { %1243 = vmatprep.subr.bf16.mxu1 %v1395_v3  ;;  %v1403_v11 = vld [vmem:[#allocation8 + $0x50] sm:$0xff]   ;;  %v1409_v13 = vld [vmem:[%s1773_s29] sm:$0xff]   ;;  %v1404_v14 = vld [vmem:[#allocation8 + $0x8] sm:$0xff]   ;;  %p1511_p1 = scmp.ne.s32.totalorder %s1800_s27, %s1510_s30  ;;  %s1514_s26 = sshll.u32 %s1605_s7, 4  ;;  %s1515_s26 = int_to_ptr.vmem [resolvable:$false] %s1514_s26 }
  0x58   : > { %v1408_v12 = vld [vmem:[%s1766_s13] sm:$0xff]   ;;  %1257 = vmatprep.mubr.bf16.mxu1 %v1409_v13  ;;  %v1405_v15 = vld [vmem:[#allocation8 + $0x48] sm:$0xff]   ;;  %v1406_v16 = vld [vmem:[#allocation8] sm:$0xff]   ;;  %s1516_s6 = scalar_lea.vmem %s1515_s26, 1024  ;;  %p1517_p10 = scmp.lt.s32.totalorder %s1800_s27, %s1515_s26 }
  0x59   : > { %1220 = vmatpush3.bf16.msra.mxu0 %v1394_v2  ;;  %1233 = vmatprep.mubr.bf16.mxu0 %v1408_v12  ;;  %v1407_v17 = vld [vmem:[#allocation8 + $0x40] sm:$0xff]   ;;  %v1412_v18 = vld [vmem:[#allocation8 + $0xb8] sm:$0xff]   ;;  %v1413_v21 = vld [vmem:[#allocation8 + $0xb0] sm:$0xff]   ;;  %p1512_p4 = pnand %p1511_p1, %p1714_p0  ;;  %p1518_p7 = scmp.lt.s32.totalorder %s1516_s6, %s1510_s30 }
  0x5a   : > { %1244 = vmatpush3.bf16.msra.mxu1 %v1395_v3  ;;  %1221 = vmatprep.subr.bf16.mxu0 %v1396_v4  ;;  %v1410_v19 = vld [vmem:[%s1766_s13 + $0x8] sm:$0xff]   ;;  %v1411_v20 = vld [vmem:[%s1773_s29 + $0x8] sm:$0xff]   ;;  %v1418_v23 = vld [vmem:[%s1773_s29 + $0x10] sm:$0xff]  }
  0x5b   : > { %1245 = vmatprep.subr.bf16.mxu1 %v1397_v5  ;;  %v1417_v22 = vld [vmem:[%s1766_s13 + $0x10] sm:$0xff]   ;;  %v1419_v25 = vld [vmem:[%s1766_s13 + $0x18] sm:$0xff]   ;;  %v1420_v26 = vld [vmem:[%s1773_s29 + $0x18] sm:$0xff]   ;;  %p1513_p8 = pneg %p1512_p4  ;;  %p1519_p2 = por %p1518_p7, %p1517_p10 }
  0x5c   : > { %v1414_v24 = vld [vmem:[#allocation8 + $0xa8] sm:$0xff]   ;;  %v1415_v27 = vld [vmem:[#allocation8 + $0xa0] sm:$0xff]   ;;  %v1424_v28 = vld [vmem:[%s1766_s13 + $0x4] sm:$0xff]  }
  0x5d   : > { %1222 = vmatpush3.bf16.msra.mxu0 %v1396_v4  ;;  %v1425_v29 = vld [vmem:[%s1766_s13 + $0x14] sm:$0xff]   ;;  %v1416_v30 = vld [vmem:[#allocation8 + $0x98] sm:$0xff]   ;;  %v1421_v31 = vld [vmem:[#allocation8 + $0x90] sm:$0xff]   ;;  %p1520_p9 = pnand %p1519_p2, %p1513_p8 }
  0x5e   : > { %1246 = vmatpush3.bf16.msra.mxu1 %v1397_v5  ;;  %1223 = vmatprep.subr.bf16.mxu0 %v1398_v6  ;;  %v1422_v32 = vld [vmem:[#allocation8 + $0x88] sm:$0xff]   ;;  %v1423_v33 = vld [vmem:[#allocation8 + $0x80] sm:$0xff]   ;;  %v1135_v59 = vld [vmem:[%s1855_s3] ss:$0 sm:$0xff] }
  0x5f   : > { %1247 = vmatprep.subr.bf16.mxu1 %v1399_v7  ;;  %v1426_v34 = vld [vmem:[%s1766_s13 + $0xc] sm:$0xff]   ;;  %v1427_v35 = vld [vmem:[%s1766_s13 + $0x1c] sm:$0xff]  }
  0x61   : > { %1224 = vmatpush3.bf16.msra.mxu0 %v1398_v6 }
  0x62   : > { %1248 = vmatpush3.bf16.msra.mxu1 %v1399_v7  ;;  %1225 = vmatprep.subr.bf16.mxu0 %v1400_v8 }
  0x63   : > { %1249 = vmatprep.subr.bf16.mxu1 %v1401_v9 }
  0x65   : > { %1226 = vmatpush3.bf16.msra.mxu0 %v1400_v8 }
  0x66   : > { %1250 = vmatpush3.bf16.msra.mxu1 %v1401_v9  ;;  %1227 = vmatprep.subr.bf16.mxu0 %v1402_v10 }
  0x67   : > { %1251 = vmatprep.subr.bf16.mxu1 %v1403_v11 }
  0x69   : > { %1228 = vmatpush3.bf16.msra.mxu0 %v1402_v10 }
  0x6a   : > { %1252 = vmatpush3.bf16.msra.mxu1 %v1403_v11  ;;  %1229 = vmatprep.subr.bf16.mxu0 %v1404_v14 }
  0x6b   : > { %1253 = vmatprep.subr.bf16.mxu1 %v1405_v15 }
  0x6d   : > { %1230 = vmatpush3.bf16.msra.mxu0 %v1404_v14 }
  0x6e   : > { %1254 = vmatpush3.bf16.msra.mxu1 %v1405_v15  ;;  %1231 = vmatprep.subr.bf16.mxu0 %v1406_v16 }
  0x6f   : > { %1255 = vmatprep.subr.bf16.mxu1 %v1407_v17 }
  0x71   : > { %1232 = vmatpush3.bf16.msra.mxu0 %v1406_v16 }
  0x72   : > { %1256 = vmatpush3.bf16.msra.mxu1 %v1407_v17  ;;  %1265 = vmatprep.subr.bf16.mxu0 %v1412_v18 }
  0x73   : > { %1289 = vmatprep.subr.bf16.mxu1 %v1412_v18 }
  0x74   : > { %1234 = vmatmul.mubr.bf16.vlgmr.msra.gmra.mxu0 %v1410_v19 }
  0x75   : > { %1258 = vmatmul.mubr.bf16.vlgmr.msra.gmra.mxu1 %v1411_v20  ;;  %1266 = vmatpush3.bf16.msra.mxu0 %v1412_v18 }
  0x76   : > { %1297 = vmatpush3.bf16.msra.mxu1 %v1412_v18  ;;  %1267 = vmatprep.subr.bf16.mxu0 %v1413_v21 }
  0x77   : > { %1290 = vmatprep.subr.bf16.mxu1 %v1413_v21  ;;  %1237 = vmatprep.mubr.bf16.mxu0 %v1417_v22 }
  0x78   : > { %1261 = vmatprep.mubr.bf16.mxu1 %v1418_v23 }
  0x79   : > { %1268 = vmatpush3.bf16.msra.mxu0 %v1413_v21 }
  0x7a   : > { %1298 = vmatpush3.bf16.msra.mxu1 %v1413_v21  ;;  %1269 = vmatprep.subr.bf16.mxu0 %v1414_v24 }
  0x7b   : > { %1291 = vmatprep.subr.bf16.mxu1 %v1414_v24 }
  0x7c   : > { %1238 = vmatmul.mubr.bf16.gmra.mxu0 %v1419_v25 }
  0x7d   : > { %1270 = vmatpush3.bf16.msra.mxu0 %v1414_v24  ;;  %1262 = vmatmul.mubr.bf16.gmra.mxu1 %v1420_v26 }
  0x7e   : > { %1299 = vmatpush3.bf16.msra.mxu1 %v1414_v24  ;;  %1271 = vmatprep.subr.bf16.mxu0 %v1415_v27 }
  0x7f   : > { %1292 = vmatprep.subr.bf16.mxu1 %v1415_v27  ;;  %1281 = vmatprep.mubr.bf16.mxu0 %v1424_v28 }
  0x80   : > { %1285 = vmatprep.mubr.bf16.mxu1 %v1425_v29 }
  0x81   : > { %1272 = vmatpush3.bf16.msra.mxu0 %v1415_v27 }
  0x82   : > { %1300 = vmatpush3.bf16.msra.mxu1 %v1415_v27  ;;  %1273 = vmatprep.subr.bf16.mxu0 %v1416_v30 }
  0x83   : > { %1293 = vmatprep.subr.bf16.mxu1 %v1416_v30 }
  0x85   : > { %1274 = vmatpush3.bf16.msra.mxu0 %v1416_v30 }
  0x86   : > { %1301 = vmatpush3.bf16.msra.mxu1 %v1416_v30  ;;  %1275 = vmatprep.subr.bf16.mxu0 %v1421_v31 }
  0x87   : > { %1294 = vmatprep.subr.bf16.mxu1 %v1421_v31 }
  0x89   : > { %1276 = vmatpush3.bf16.msra.mxu0 %v1421_v31 }
  0x8a   : > { %1302 = vmatpush3.bf16.msra.mxu1 %v1421_v31  ;;  %1277 = vmatprep.subr.bf16.mxu0 %v1422_v32 }
  0x8b   : > { %1295 = vmatprep.subr.bf16.mxu1 %v1422_v32 }
  0x8d   : > { %1278 = vmatpush3.bf16.msra.mxu0 %v1422_v32 }
  0x8e   : > { %1303 = vmatpush3.bf16.msra.mxu1 %v1422_v32  ;;  %1279 = vmatprep.subr.bf16.mxu0 %v1423_v33 }
  0x8f   : > { %1296 = vmatprep.subr.bf16.mxu1 %v1423_v33 }
  0x91   : > { %1280 = vmatpush3.bf16.msra.mxu0 %v1423_v33 }
  0x92   : > { %1304 = vmatpush3.bf16.msra.mxu1 %v1423_v33 }
  0x94   : > { %1282 = vmatmul.mubr.bf16.vlgmr.msra.gmra.mxu0 %v1426_v34 }
  0x95   : > { %1286 = vmatmul.mubr.bf16.vlgmr.msra.gmra.mxu1 %v1427_v35 }
 0x134   : > { %v1235_v36 = vpop.f32.mrf.mxu0 }
 0x135   : > { %v1259_v37 = vpop.f32.mrf.mxu1 }
 0x136   : > { %v474_v38 = vpop.f32.mrf.mxu0  ;;  %v677_v51 = vadd.f32 %v1259_v37, %v1235_v36 }
 0x137   : > { %v644_v39 = vpop.f32.mrf.mxu1 }
 0x138   : > { %v1236_v40 = vpop.f32.mrf.mxu0  ;;  %v675_v55 = vadd.f32 %v644_v39, %v474_v38 }
 0x139   : > { %v1260_v41 = vpop.f32.mrf.mxu1 }
 0x13a   : > { %v477_v42 = vpop.f32.mrf.mxu0  ;;  %v678_v62 = vadd.f32 %v1260_v41, %v1236_v40 }
 0x13b   : > { %v647_v43 = vpop.f32.mrf.mxu1 }
 0x13c   : > { %v1239_v44 = vpop.f32.mrf.mxu0  ;;  %v676_v4 = vadd.f32 %v647_v43, %v477_v42 }
 0x13d   : > { %v1263_v45 = vpop.f32.mrf.mxu1 }
 0x13e   : > { %v490_v46 = vpop.f32.mrf.mxu0  ;;  %v681_v53 = vadd.f32 %v1263_v45, %v1239_v44 }
 0x13f   : > { %v660_v47 = vpop.f32.mrf.mxu1 }
 0x140   : > { %v1240_v48 = vpop.f32.mrf.mxu0  ;;  %v679_v58 = vadd.f32 %v660_v47, %v490_v46 }
 0x141   : > { %v1264_v49 = vpop.f32.mrf.mxu1 }
 0x142   : > { %v493_v50 = vpop.f32.mrf.mxu0  ;;  %v682_v1 = vadd.f32 %v1264_v49, %v1240_v48 }
 0x143   : > { %v663_v52 = vpop.f32.mrf.mxu1 }
 0x144   : > { %v680_v8 = vadd.f32 %v663_v52, %v493_v50 }
 0x154   : > { %v1283_v54 = vpop.f32.mrf.mxu0 }
 0x155   : > { %v847_v56 = vadd.f32 %v1283_v54, %v677_v51  ;;  %v1287_v57 = vpop.f32.mrf.mxu1 }
 0x156   : > { %v851_v60 = vadd.f32 %v1287_v57, %v681_v53  ;;  %v814_v61 = vpop.f32.mrf.mxu0 }
 0x157   : > { %v845_v63 = vadd.f32 %v814_v61, %v675_v55  ;;  %v830_v0 = vpop.f32.mrf.mxu1  ;;  %v881_v5 = vadd.f32 %v1135_v59, %v847_v56 }
 0x158   : > { %v849_v2 = vadd.f32 %v830_v0, %v679_v58  ;;  %v1284_v3 = vpop.f32.mrf.mxu0  ;;  %v885_v9 = vadd.f32 %v1135_v59, %v851_v60 }
 0x159   : > { %v848_v6 = vadd.f32 %v1284_v3, %v678_v62  ;;  %v1288_v7 = vpop.f32.mrf.mxu1  ;;  %v879_v12 = vadd.f32 %v1135_v59, %v845_v63  ;;  %v889_v19 = vmax.f32 %v881_v5, 0.0 }
 0x15a   : > { %v852_v10 = vadd.f32 %v1288_v7, %v682_v1  ;;  %v817_v11 = vpop.f32.mrf.mxu0  ;;  %v883_v16 = vadd.f32 %v1135_v59, %v849_v2  ;;  %v893_v22 = vmax.f32 %v885_v9, 0.0 }
 0x15b   : > { %v882_v13 = vadd.f32 %v1135_v59, %v848_v6  ;;  %v846_v14 = vadd.f32 %v817_v11, %v676_v4  ;;  %v833_v15 = vpop.f32.mrf.mxu1  ;;  %v887_v25 = vmax.f32 %v879_v12, 0.0 }
 0x15c   : > { %v886_v17 = vadd.f32 %v1135_v59, %v852_v10  ;;  %v850_v18 = vadd.f32 %v833_v15, %v680_v8  ;;  %v891_v28 = vmax.f32 %v883_v16, 0.0 }
 0x15d   : > { %v890_v20 = vmax.f32 %v882_v13, 0.0  ;;  %v880_v21 = vadd.f32 %v1135_v59, %v846_v14 }
 0x15e   : > { %v894_v23 = vmax.f32 %v886_v17, 0.0  ;;  %v884_v24 = vadd.f32 %v1135_v59, %v850_v18 }
 0x15f   : > { %v1166_v26 = vpack.c.bf16 %v890_v20, %v889_v19  ;;  %v888_v27 = vmax.f32 %v880_v21, 0.0 }
 0x160   : > { %v1176_v29 = vpack.c.bf16 %v894_v23, %v893_v22  ;;  %v892_v30 = vmax.f32 %v884_v24, 0.0 }
 0x161   : > { %1178 = vst [vmem:[%s318_s22 + $0x8] sm:$0xff] %v1166_v26   ;;  %v1161_v31 = vpack.c.bf16 %v888_v27, %v887_v25 }
 0x162   : > { %1180 = vst [vmem:[%s318_s22 + $0x18] sm:$0xff] %v1176_v29   ;;  %v1171_v32 = vpack.c.bf16 %v892_v30, %v891_v28 }
 0x163   : > { %1162 = vst [vmem:[%s318_s22] sm:$0xff] %v1161_v31  }
 0x164   : > { %1179 = vst [vmem:[%s318_s22 + $0x10] sm:$0xff] %v1171_v32  }
 0x165   : > { %1523 = shalt.err (!%p1520_p9)
}
 0x166   : > { %s1524_s2 = scalar_lea.hbm %s1805_s12, 512  ;;  %s1528_s17 = scalar_lea.hbm %s1856_s4, 4096 }
 0x167   : > { %p1525_p11 = scmp.ne.s32.totalorder %s1805_s12, %s1524_s2  ;;  %p1529_p3 = scmp.lt.s32.totalorder %s1805_s12, %s1856_s4 }
 0x168   : > { %p1530_p5 = scmp.lt.s32.totalorder %s1528_s17, %s1524_s2 }
 0x169   : > { %p1526_p12 = pnand %p1525_p11, %p1714_p0 }
 0x16a   : > { %p1531_p1 = por %p1530_p5, %p1529_p3 }
 0x16b   : > { %p1527_p13 = pneg %p1526_p12 }
 0x16d   : > { %p1532_p4 = pnand %p1531_p1, %p1527_p13 }
 0x16f   : > { %1535 = shalt.err (!%p1532_p4)
}
 0x170   : > { %s1606_s25 = smov 64   ;;  %s1607_s29 = smov 4  }
 0x171   : > { %1318 = dma.vmem_to_hbm [thread:$0]  (%p1714_p0), %s1800_s27, 512, %s1805_s12, %s936_s18, %s1606_s25, %s1606_s25, %s1607_s29  }
 0x172 PF: > { %p1338_p8 = scmp.ge.s32.totalorder %s1598_s20, 2  ;;  %s965_s21 = sand.u32 1, %s1578_s15  }
 0x173   : > { %s966_s23 = scalar_lea.sflag [#allocation5], %s965_s21 }
 0x174   : > { %p1332_p10 = pnand %p1338_p8, %p1678_p6 }
 0x176   : > { %p1333_p7 = pneg %p1332_p10 }
 0x178   : > { %1573 = dma.done.wait (%p1333_p7), %s966_s23, 512  }
 0x179   : > { %1575 = vsyncadd (%p1333_p7), %s966_s23, 4294966784  ;;  %s23_s20 = sadd.s32 1, %s1598_s20   ;;  %s1881_s14 = sld [smem:[#allocation14_spill]] }
 0x17a   : > { %p20_p2 = scmp.ge.s32.totalorder %s23_s20, 10   ;;  %s1882_s17 = sld [smem:[#allocation17_spill]] }
 0x17b   : > { %s1883_s18 = sld [smem:[#allocation15_spill]]  ;;  %s1885_s15 = smov %s1582_s16 }
 0x17c   : > { %s1884_s19 = sld [smem:[#allocation16_spill]]  ;;  %22 = sbr.rel (!%p20_p2) target bundleno = 11 (0xb), region = 112 }
 0x17f   : > { %s1886_s16 = smov %s1881_s14 }
 0x181   :  { %971 = vsyncpa [#allocation4], 1 }
 0x182   :  { %973 = vsyncpa [#allocation4 + $0x1], 1 }
 0x183   :  { %974 = vsyncpa [#allocation7], 1 }
 0x184   :  { %976 = vsyncpa [#allocation7 + $0x1], 1 }
 0x185   :  { %977 = vsyncpa [#allocation5], 1 }
 0x186   :  { %979 = vsyncpa [#allocation5 + $0x1], 1 }

</bundles_post_ra>
